<compile_context>
chip_gen: v7x
topology: tpu7x:2x2x1
jax: 0.10.0
libtpu: 0.0.40
codegen_flags: <defaults>
</compile_context>

<pallas_src>
import jax
import jax.numpy as jnp
from jax import lax
from jax.experimental import pallas as pl
from jax.experimental.pallas import tpu as pltpu

EPS = 1e-5


def _softplus(x):
    # numerically-stable softplus = log(1 + exp(x))
    return jnp.maximum(x, 0.0) + jnp.log1p(jnp.exp(-jnp.abs(x)))


def _sigmoid(x):
    # one EUP transcendental (tanh) instead of exp + reciprocal
    return 0.5 * (jnp.tanh(0.5 * x) + 1.0)


def _round_up(x, m):
    return (x + m - 1) // m * m


def _vmem_capacity_bytes():
    try:
        info = pltpu.get_tpu_info()
        v = getattr(info, "vmem_capacity_bytes", None)
        if v:
            return int(v)
    except Exception:
        pass
    return 64 * 1024 * 1024  # conservative (v7x) fallback


def _pick_tile_n(n, feat_cols, slab_cols, out_cols, itemsize, vmem_bytes):
    # VMEM per node row: double-buffered packed features + f32 slab temporaries
    # + double-buffered f32 output rows.
    row_bytes = 2 * feat_cols * itemsize + 4 * slab_cols + 2 * 4 * out_cols
    budget = min(vmem_bytes // 4, 32 * 1024 * 1024)
    tn = budget // max(row_bytes, 1)
    tn = max(8, min(1024, (tn // 8) * 8))
    # cap so the grid has >= ~8 steps (DMA/compute overlap + megacore sharding),
    # never below the 8-row sublane minimum
    cap = _round_up(pl.cdiv(_round_up(n, 8), 8), 8)
    return min(tn, max(8, cap))


# --------------------------------------------------------------------------- #
# Pass 1: per-tile BNorm1 batch statistics of the FC_full pre-activation.
# --------------------------------------------------------------------------- #
def _stats_kernel(feat_ref, w_ref, sum_ref, sumsq_ref):
    # feat_ref : (TN, K)   packed [atom_i | (atom_j | bond)_m ...], mxu dtype
    # w_ref    : (K, C)    replicated / block-diagonal FC_full weight
    # sum_ref / sumsq_ref : (1, 1, C) f32 per-tile partial statistics
    g = jnp.dot(feat_ref[...], w_ref[...], preferred_element_type=jnp.float32)
    sum_ref[...] = jnp.sum(g, axis=0, keepdims=True)[None]
    sumsq_ref[...] = jnp.sum(g * g, axis=0, keepdims=True)[None]


# --------------------------------------------------------------------------- #
# Pass 2: (BN1-folded) gate + neighbor-sum reduction.
# --------------------------------------------------------------------------- #
def _gate_kernel(feat_ref, w_ref, off_ref, sel_ref, out_ref):
    # w_ref already carries BN1 scale; off_ref = -mean1*scale1 per output lane.
    # Lanes [0, M*A) = filter channels, [M*A, 2*M*A) = core channels.
    ma = sel_ref.shape[0]
    g = jnp.dot(feat_ref[...], w_ref[...],
                preferred_element_type=jnp.float32) + off_ref[...]
    prod = _sigmoid(g[:, :ma]) * _softplus(g[:, ma:])            # (TN, M*A)
    # neighbor (M) reduction as a selection matmul on the otherwise idle MXU
    out_ref[...] = jnp.dot(prod, sel_ref[...], preferred_element_type=jnp.float32)
    # TODO(synk): out is (TN, A=16) -> 16/128-lane stores; pack 8 node rows per
    # 128-lane slab here too if the pass-2 store path ever shows in profiles.


# --------------------------------------------------------------------------- #
# Pass 3: BNorm2 + residual + softplus, lane-packed (rows, 8*A) elementwise.
# --------------------------------------------------------------------------- #
def _finalize_kernel(atom_ref, summed_ref, mean_ref, scale_ref, out_ref):
    s = (summed_ref[...] - mean_ref[...]) * scale_ref[...]
    out_ref[...] = _softplus(atom_ref[...] + s)


# --------------------------------------------------------------------------- #
# Wrapper
# --------------------------------------------------------------------------- #
def graph_conv_forward(atom, bond, bond_idx, w, b, *,
                       mxu_dtype=jnp.bfloat16, tile_n=None):
    """atom (N,A) f32, bond (N,M,B) f32, bond_idx (N,M) int32,
    w (2A, 2A+B) PyTorch Linear layout, b (2A,).
    mxu_dtype: dtype of the big matmul operands (bf16 = v6e/v7x fast path);
    accumulation, BN statistics and all elementwise math stay f32."""
    del b  # FC_full bias cancels exactly under affine=False batch-stat BNorm1
    N, A = atom.shape
    _, M, Bd = bond.shape
    K = A + M * (A + Bd)      # packed feature width
    MA = M * A
    C = 2 * MA                # permuted FC_full output width (= M * 2A lanes)
    f32 = jnp.float32

    atom_f32 = atom.astype(f32)
    atom_mx = atom.astype(mxu_dtype)

    # ---- packed per-node operand, built once and read by both passes -------
    # TODO(synk): move this row gather in-kernel (VMEM-resident atom table +
    # bond_idx block) once Mosaic exposes a general sublane dynamic-gather;
    # that removes the remaining (N, M*(A+B)) HBM intermediate.
    atom_j = atom_mx[bond_idx]                                   # (N, M, A)
    feat = jnp.concatenate(
        [atom_mx,
         jnp.concatenate([atom_j, bond.astype(mxu_dtype)], axis=-1)
           .reshape(N, M * (A + Bd))],
        axis=-1)                                                 # (N, K)

    # ---- replicated / block-diagonal weight, permuted output columns -------
    # lane m*A + c        -> filter channel c of neighbor m
    # lane MA + m*A + c   -> core   channel c of neighbor m
    wt = w.T.astype(f32)                                         # (2A+B, 2A)
    w1, w2, w3 = wt[:A], wt[A:2 * A], wt[2 * A:]
    w_big = jnp.zeros((K, C), f32)
    for m in range(M):
        fcols = slice(m * A, (m + 1) * A)
        ccols = slice(MA + m * A, MA + (m + 1) * A)
        r0 = A + m * (A + Bd)
        w_big = w_big.at[:A, fcols].set(w1[:, :A])
        w_big = w_big.at[:A, ccols].set(w1[:, A:])
        w_big = w_big.at[r0:r0 + A, fcols].set(w2[:, :A])
        w_big = w_big.at[r0:r0 + A, ccols].set(w2[:, A:])
        w_big = w_big.at[r0 + A:r0 + A + Bd, fcols].set(w3[:, :A])
        w_big = w_big.at[r0 + A:r0 + A + Bd, ccols].set(w3[:, A:])
    w_mx = w_big.astype(mxu_dtype)
    # TODO(synk): if M*2A grows far beyond a few hundred lanes, chunk the m
    # groups (128 // (2A) neighbors per chunk) instead of one wide slab.

    sel = jnp.tile(jnp.eye(A, dtype=f32), (M, 1))                # (M*A, A)

    # ---- tiling ------------------------------------------------------------
    vmem_bytes = _vmem_capacity_bytes()
    if tile_n is None:
        tile_n = _pick_tile_n(N, K, C, A, jnp.dtype(mxu_dtype).itemsize,
                              vmem_bytes)
    tile_n = max(8, _round_up(int(tile_n), 8))
    n_pad = _round_up(N, tile_n)
    pad = n_pad - N
    if pad:
        # Zero-padded rows contribute exactly 0 to BN1 sums / sums-of-squares
        # (bias dropped, affine=False); denominators use the true N*M.
        feat = jnp.pad(feat, ((0, pad), (0, 0)))
        atom_f32 = jnp.pad(atom_f32, ((0, pad), (0, 0)))
    n_tiles = n_pad // tile_n

    cparams = pltpu.CompilerParams(
        dimension_semantics=("parallel",),
        vmem_limit_bytes=int(min(vmem_bytes // 2, 64 * 1024 * 1024)),
    )

    feat_spec = pl.BlockSpec((tile_n, K), lambda i: (i, 0))
    w_spec = pl.BlockSpec((K, C), lambda i: (0, 0))
    off_spec = pl.BlockSpec((1, C), lambda i: (0, 0))
    sel_spec = pl.BlockSpec((MA, A), lambda i: (0, 0))
    sum_spec = pl.BlockSpec((tile_n, A), lambda i: (i, 0))
    stat_spec = pl.BlockSpec((1, 1, C), lambda i: (i, 0, 0))

    # ---- pass 1: BN1 batch statistics (per-tile partials) ------------------
    part_sum, part_sumsq = pl.pallas_call(
        _stats_kernel,
        out_shape=(jax.ShapeDtypeStruct((n_tiles, 1, C), f32),
                   jax.ShapeDtypeStruct((n_tiles, 1, C), f32)),
        grid=(n_tiles,),
        in_specs=[feat_spec, w_spec],
        out_specs=(stat_spec, stat_spec),
        compiler_params=cparams,
    )(feat, w_mx)

    cnt1 = float(N * M)
    lane_sum = jnp.sum(part_sum[:, 0, :], axis=0)                # (C,)
    lane_sumsq = jnp.sum(part_sumsq[:, 0, :], axis=0)
    # pool the M lanes belonging to the same BN channel
    ch_sum = jnp.concatenate([lane_sum[:MA].reshape(M, A).sum(0),
                              lane_sum[MA:].reshape(M, A).sum(0)])
    ch_sumsq = jnp.concatenate([lane_sumsq[:MA].reshape(M, A).sum(0),
                                lane_sumsq[MA:].reshape(M, A).sum(0)])
    mean1 = ch_sum / cnt1
    var1 = jnp.maximum(ch_sumsq / cnt1 - mean1 * mean1, 0.0)
    scale1 = lax.rsqrt(var1 + EPS)

    # ---- fold BN1 into the pass-2 weights + one offset row -----------------
    lane_scale = jnp.concatenate([jnp.tile(scale1[:A], M), jnp.tile(scale1[A:], M)])
    lane_mean = jnp.concatenate([jnp.tile(mean1[:A], M), jnp.tile(mean1[A:], M)])
    w_scaled = (w_big * lane_scale[None, :]).astype(mxu_dtype)
    off = (-lane_mean * lane_scale).reshape(1, C).astype(f32)

    # ---- pass 2: gate + neighbor-sum reduction ------------------------------
    summed = pl.pallas_call(
        _gate_kernel,
        out_shape=jax.ShapeDtypeStruct((n_pad, A), f32),
        grid=(n_tiles,),
        in_specs=[feat_spec, w_spec, off_spec, sel_spec],
        out_specs=sum_spec,
        compiler_params=cparams,
    )(feat, w_scaled, off, sel)

    # ---- BN2 statistics: tiny (N, A) reduction in plain JAX ----------------
    sv = summed[:N]
    mean2 = jnp.mean(sv, axis=0)
    var2 = jnp.mean(jnp.square(sv - mean2[None, :]), axis=0)
    scale2 = lax.rsqrt(var2 + EPS)

    # ---- pass 3: BN2 + residual + softplus, lane-packed ---------------------
    rows = n_pad // 8
    tile_r = tile_n // 8
    if tile_r % 8 != 0:          # small problem: one full block (valid layout)
        tile_r = rows
    grid3 = rows // tile_r
    packed_spec = pl.BlockSpec((tile_r, 8 * A), lambda i: (i, 0))
    row_spec = pl.BlockSpec((1, 8 * A), lambda i: (0, 0))
    out_p = pl.pallas_call(
        _finalize_kernel,
        out_shape=jax.ShapeDtypeStruct((rows, 8 * A), f32),
        grid=(grid3,),
        in_specs=[packed_spec, packed_spec, row_spec, row_spec],
        out_specs=packed_spec,
        compiler_params=cparams,
    )(atom_f32.reshape(rows, 8 * A), summed.reshape(rows, 8 * A),
      jnp.tile(mean2, 8).reshape(1, 8 * A), jnp.tile(scale2, 8).reshape(1, 8 * A))

    return out_p.reshape(n_pad, A)[:N]


# --------------------------------------------------------------------------- #
# Pure-JAX reference (mirrors the PyTorch forward, training-mode BN).
# `mxu_dtype` applies the kernel's MXU input-rounding policy (accumulation f32).
# --------------------------------------------------------------------------- #
def graph_conv_reference(atom, bond, bond_idx, w, b, *, mxu_dtype=jnp.float32):
    N, A = atom.shape
    _, M, Bd = bond.shape
    a_m = atom.astype(mxu_dtype).astype(jnp.float32)
    b_m = bond.astype(mxu_dtype).astype(jnp.float32)
    w_m = w.astype(mxu_dtype).astype(jnp.float32)

    atom_bond = a_m[bond_idx]                                       # (N, M, A)
    total = jnp.concatenate(
        [jnp.broadcast_to(a_m[:, None, :], (N, M, A)), atom_bond, b_m], axis=2)
    g = total @ w_m.T + b                                           # (N, M, 2A)
    mean1 = jnp.mean(g, axis=(0, 1), keepdims=True)
    var1 = jnp.mean((g - mean1) ** 2, axis=(0, 1), keepdims=True)
    g = (g - mean1) / jnp.sqrt(var1 + EPS)
    gf, gc = g[..., :A], g[..., A:]
    prod = (1.0 / (1.0 + jnp.exp(-gf))) * _softplus(gc)
    summed = jnp.sum(prod, axis=1)                                  # (N, A)
    mean2 = jnp.mean(summed, axis=0, keepdims=True)
    var2 = jnp.mean((summed - mean2) ** 2, axis=0, keepdims=True)
    summed = (summed - mean2) / jnp.sqrt(var2 + EPS)
    return _softplus(atom.astype(jnp.float32) + summed)


if __name__ == "__main__":
    # config: atom_dim=16, bond_dim=8; graph with N=8 atoms, M=4 neighbors each
    atom_dim, bond_dim = 16, 8
    N, M = 8, 4

    key = jax.random.PRNGKey(0)
    k_atom, k_bond, k_idx, k_w, k_b = jax.random.split(key, 5)

    atom = jax.random.normal(k_atom, (N, atom_dim), dtype=jnp.float32)
    bond = jax.random.normal(k_bond, (N, M, bond_dim), dtype=jnp.float32)
    bond_idx = jax.random.randint(k_idx, (N, M), 0, N, dtype=jnp.int32)

    # deterministic Linear params (PyTorch-style uniform +/- 1/sqrt(fan_in))
    fan_in = 2 * atom_dim + bond_dim
    bound = 1.0 / (fan_in ** 0.5)
    w = jax.random.uniform(k_w, (2 * atom_dim, fan_in), jnp.float32, -bound, bound)
    b = jax.random.uniform(k_b, (2 * atom_dim,), jnp.float32, -bound, bound)

    # f32 MXU path. Tolerance covers only hardware-transcendental ulp
    # differences (kernel's tanh-form sigmoid vs XLA's exp-form); structural
    # errors would be O(1).
    out_f32 = jax.block_until_ready(
        graph_conv_forward(atom, bond, bond_idx, w, b, mxu_dtype=jnp.float32))
    ref_f32 = graph_conv_reference(atom, bond, bond_idx, w, b, mxu_dtype=jnp.float32)
    assert out_f32.shape == (N, atom_dim) and out_f32.dtype == jnp.float32
    assert jnp.allclose(out_f32, ref_f32, atol=1e-3, rtol=1e-3), (
        "f32 max abs diff", float(jnp.max(jnp.abs(out_f32 - ref_f32))))

    # bf16 MXU path (v6e/v7x fast path). Looser tolerance: bf16 input rounding
    # plus BN1 scale folded into the bf16 weights (reference folds after).
    out_bf16 = jax.block_until_ready(
        graph_conv_forward(atom, bond, bond_idx, w, b, mxu_dtype=jnp.bfloat16))
    ref_bf16 = graph_conv_reference(atom, bond, bond_idx, w, b, mxu_dtype=jnp.bfloat16)
    assert out_bf16.shape == (N, atom_dim)
    assert jnp.allclose(out_bf16, ref_bf16, atol=5e-2, rtol=5e-2), (
        "bf16 max abs diff", float(jnp.max(jnp.abs(out_bf16 - ref_bf16))))

    print("KERNEL_OK")
</pallas_src>

<mosaic_0001>
module attributes {stable_mosaic.version = 11 : i64} {
  func.func @_stats_kernel(%arg0: i32, %arg1: memref<8x112xf32, #tpu.memory_space<vmem>>, %arg2: memref<112x128xf32, #tpu.memory_space<vmem>>, %arg3: memref<1x1x128xf32, #tpu.memory_space<vmem>>, %arg4: memref<1x1x128xf32, #tpu.memory_space<vmem>>) attributes {dimension_semantics = [#tpu.dimension_semantics<parallel>], iteration_bounds = array<i64: 1>, scalar_prefetch = 0 : i64, scratch_operands = 0 : i64, tpu.core_type = #tpu.core_type<tc>, window_params = [{transform_indices = @transform_0, window_bounds = array<i64: 8, 112>}, {pipeline_mode = #tpu.pipeline_mode<synchronous>, transform_indices = @transform_1, window_bounds = array<i64: 112, 128>}, {transform_indices = @transform_2, window_bounds = array<i64: 1, 1, 128>}, {transform_indices = @transform_3, window_bounds = array<i64: 1, 1, 128>}]} {
    %c0 = arith.constant 0 : index
    %c0_0 = arith.constant 0 : index
    %0 = vector.load %arg1[%c0, %c0_0] : memref<8x112xf32, #tpu.memory_space<vmem>>, vector<8x112xf32>
    %c0_1 = arith.constant 0 : index
    %c0_2 = arith.constant 0 : index
    %1 = vector.load %arg2[%c0_1, %c0_2] : memref<112x128xf32, #tpu.memory_space<vmem>>, vector<112x128xf32>
    %cst = arith.constant dense<0.000000e+00> : vector<8x128xf32>
    %2 = tpu.matmul %0, %1, %cst {dimension_numbers = #tpu.dot_dimension_numbers<[1], [0], [0], [1], [0, 0, 1, 1], [], []>} : vector<8x112xf32>, vector<112x128xf32>, vector<8x128xf32> -> vector<8x128xf32>
    %cst_3 = arith.constant dense<0.000000e+00> : vector<128xf32>
    %3 = vector.multi_reduction <add>, %2, %cst_3 [0] : vector<8x128xf32> to vector<128xf32>
    %4 = vector.shape_cast %3 : vector<128xf32> to vector<1x128xf32>
    %5 = vector.shape_cast %4 : vector<1x128xf32> to vector<1x1x128xf32>
    %c0_4 = arith.constant 0 : index
    %c0_5 = arith.constant 0 : index
    %c0_6 = arith.constant 0 : index
    %6 = vector.load %arg3[%c0_4, %c0_5, %c0_6] : memref<1x1x128xf32, #tpu.memory_space<vmem>>, vector<1x1x128xf32>
    tpu.vector_store %arg3[%c0_4, %c0_5, %c0_6], %5 {strides = array<i32>} : memref<1x1x128xf32, #tpu.memory_space<vmem>>, vector<1x1x128xf32>,
    %7 = arith.mulf %2, %2 : vector<8x128xf32>
    %cst_7 = arith.constant dense<0.000000e+00> : vector<128xf32>
    %8 = vector.multi_reduction <add>, %7, %cst_7 [0] : vector<8x128xf32> to vector<128xf32>
    %9 = vector.shape_cast %8 : vector<128xf32> to vector<1x128xf32>
    %10 = vector.shape_cast %9 : vector<1x128xf32> to vector<1x1x128xf32>
    %c0_8 = arith.constant 0 : index
    %c0_9 = arith.constant 0 : index
    %c0_10 = arith.constant 0 : index
    %11 = vector.load %arg4[%c0_8, %c0_9, %c0_10] : memref<1x1x128xf32, #tpu.memory_space<vmem>>, vector<1x1x128xf32>
    tpu.vector_store %arg4[%c0_8, %c0_9, %c0_10], %10 {strides = array<i32>} : memref<1x1x128xf32, #tpu.memory_space<vmem>>, vector<1x1x128xf32>,
    return
  }
  func.func @transform_0(%arg0: i32) -> (i32, i32) {
    %c0_i32 = arith.constant 0 : i32
    %c0_i32_0 = arith.constant 0 : i32
    return %arg0, %c0_i32 : i32, i32
  }
  func.func @transform_1(%arg0: i32) -> (i32, i32) {
    %c0_i32 = arith.constant 0 : i32
    %c0_i32_0 = arith.constant 0 : i32
    %c0_i32_1 = arith.constant 0 : i32
    return %c0_i32, %c0_i32_0 : i32, i32
  }
  func.func @transform_2(%arg0: i32) -> (i32, i32, i32) {
    %c0_i32 = arith.constant 0 : i32
    %c0_i32_0 = arith.constant 0 : i32
    %c0_i32_1 = arith.constant 0 : i32
    return %arg0, %c0_i32, %c0_i32_0 : i32, i32, i32
  }
  func.func @transform_3(%arg0: i32) -> (i32, i32, i32) {
    %c0_i32 = arith.constant 0 : i32
    %c0_i32_0 = arith.constant 0 : i32
    %c0_i32_1 = arith.constant 0 : i32
    return %arg0, %c0_i32, %c0_i32_0 : i32, i32, i32
  }
}

</mosaic_0001>

<bundles_post_ra>
// kernel: tpu_custom_call.1
= control target key start
LH: loop header
LB: loop body
LE: loop exit
PB: predicated region body
PF: predicated region fallthrough
CT: control target
= control target key end

     0   :  { %9 = vsyncpa [#allocation3], 0  ;;  %s440_s0 = inlined_call_operand.hbm [shape: f32[8,112], index: 0, kind: input, shape index: {}]   ;;  %s441_s1 = inlined_call_operand.hbm [shape: f32[112,128], index: 1, kind: input, shape index: {}]   ;;  %s442_s2 = inlined_call_operand.hbm [shape: f32[1,1,128], index: 2, kind: output, shape index: {0}]   ;;  %s443_s3 = inlined_call_operand.hbm [shape: f32[1,1,128], index: 3, kind: output, shape index: {1}]  }
   0x1   :  { %10 = vsyncpa [#allocation6], 0 }
   0x2   :  { %11 = vsyncpa [#allocation4], 0 }
   0x3   :  { %12 = vsyncpa [#allocation9], 0  ;;  %s348_s12 = smov [#allocation2]   ;;  %s349_s14 = smov [#allocation5]  }
   0x4   :  { %s19_s13 = sshll.u32 %s348_s12, 4  ;;  %s28_s15 = sshll.u32 %s349_s14, 4  ;;  %s20_s13 = int_to_ptr.vmem [resolvable:$true] %s19_s13  ;;  %s377_s15 = int_to_ptr.vmem [resolvable:$true] %s28_s15 }
   0x5   :  { %s252_s18 = scalar_lea.hbm %s440_s0, 128 }
   0x6   :  { %p253_p0 = scmp.ne.s32.totalorder %s440_s0, %s252_s18  ;;  %p256_p1 = scmp.lt.u32.totalorder %s252_s18, %s440_s0 }
   0x8   :  { %p258_p2 = pnand %p256_p1, %p253_p0 }
   0xa   :  { %261 = shalt.err (!%p258_p2)
}
   0xb   :  { %s262_s23 = scalar_lea.vmem %s20_s13, 128  ;;  %p267_p4 = scmp.lt.s32.totalorder %s20_s13, %s20_s13 }
   0xc   :  { %p263_p3 = scmp.ne.s32.totalorder %s20_s13, %s262_s23  ;;  %p268_p5 = scmp.lt.s32.totalorder %s262_s23, %s262_s23 }
   0xe   :  { %p269_p6 = por %p268_p5, %p267_p4 }
  0x10   :  { %p270_p7 = pnand %p269_p6, %p263_p3 }
  0x12   :  { %273 = shalt.err (!%p270_p7)
}
  0x13   :  { %22 = dma.hbm_to_vmem [thread:$0]  %s440_s0, 128, %s20_s13, [#allocation3]  }
  0x14   :  { %s274_s28 = scalar_lea.hbm %s441_s1, 1792 }
  0x15   :  { %p275_p8 = scmp.ne.s32.totalorder %s441_s1, %s274_s28  ;;  %p278_p9 = scmp.lt.u32.totalorder %s274_s28, %s441_s1 }
  0x17   :  { %p280_p10 = pnand %p278_p9, %p275_p8 }
  0x19   :  { %283 = shalt.err (!%p280_p10)
}
  0x1a   :  { %s284_s6 = scalar_lea.vmem %s377_s15, 1792  ;;  %p289_p12 = scmp.lt.s32.totalorder %s377_s15, %s377_s15 }
  0x1b   :  { %p285_p11 = scmp.ne.s32.totalorder %s377_s15, %s284_s6  ;;  %p290_p13 = scmp.lt.s32.totalorder %s284_s6, %s284_s6 }
  0x1d   :  { %p291_p0 = por %p290_p13, %p289_p12 }
  0x1f   :  { %p292_p1 = pnand %p291_p0, %p285_p11 }
  0x21   :  { %295 = shalt.err (!%p292_p1)
}
  0x22   :  { %s350_s0 = smov 128   ;;  %s351_s7 = smov 8  }
  0x23   :  { %34 = dma.hbm_to_vmem [thread:$0]  %s441_s1, 1792, %s377_s15, [#allocation6], %s350_s0, %s350_s0, %s351_s7  }
  0x24   :  { %340 = dma.done.wait [#allocation3], 128  }
  0x25   :  { %341 = vsyncadd [#allocation3], 4294967168 }
  0x26   :  { %342 = dma.done.wait [#allocation6], 1792  }
  0x27   :  { %343 = vsyncadd [#allocation6], 4294965504  ;;  %v352_v0 = vmov 0.0|0.0   ;;  %vm353_vm0 = vmmov 0   ;;  %v354_v1 = vmov 0.0   ;;  %v42_v2 = vld [vmem:[#allocation5] sm:$0xff] }
  0x28   :  { %222 = vmatprep.subr.bf16.mxu0 %v352_v0  ;;  %219 = vmatprep.mubr.msk.f32.mxu0 %vm353_vm0, %v354_v1  ;;  %v43_v3 = vld [vmem:[#allocation5 + $0x8] sm:$0xff]  ;;  %v44_v4 = vld [vmem:[#allocation5 + $0x10] sm:$0xff]  ;;  %v45_v6 = vld [vmem:[#allocation5 + $0x18] sm:$0xff]  ;;  %vm56_vm1 = vcmask 916480   ;;  %s355_s1 = smov [#allocation7]   ;;  %s356_s11 = smov [#allocation8]  }
  0x29   :  { %v223_v5 = vpack.c.bf16 %v43_v3, %v42_v2  ;;  %v226_v7 = vpack.c.bf16 %v45_v6, %v44_v4  ;;  %v46_v8 = vld [vmem:[#allocation5 + $0x20] sm:$0xff]  ;;  %v47_v9 = vld [vmem:[#allocation5 + $0x28] sm:$0xff]  ;;  %v48_v11 = vld [vmem:[#allocation5 + $0x30] sm:$0xff]  ;;  %s151_s10 = sshll.u32 %s355_s1, 4  ;;  %s161_s12 = sshll.u32 %s356_s11, 4  ;;  %s152_s10 = int_to_ptr.vmem [resolvable:$true] %s151_s10  ;;  %s408_s12 = int_to_ptr.vmem [resolvable:$true] %s161_s12 }
  0x2a   :  { %v229_v10 = vpack.c.bf16 %v47_v9, %v46_v8  ;;  %v49_v12 = vld [vmem:[#allocation5 + $0x38] sm:$0xff]  ;;  %v50_v14 = vld [vmem:[#allocation5 + $0x40] sm:$0xff]  ;;  %v51_v15 = vld [vmem:[#allocation5 + $0x48] sm:$0xff]  ;;  %s296_s13 = scalar_lea.vmem %s152_s10, 16  ;;  %s300_s14 = scalar_lea.vmem %s152_s10, 32 }
  0x2b   :  { %224 = vmatpush3.bf16.msra.mxu0 %v223_v5  ;;  %v232_v13 = vpack.c.bf16 %v49_v12, %v48_v11  ;;  %v235_v16 = vpack.c.bf16 %v51_v15, %v50_v14  ;;  %v52_v17 = vld [vmem:[#allocation5 + $0x50] sm:$0xff]  ;;  %v53_v18 = vld [vmem:[#allocation5 + $0x58] sm:$0xff]  ;;  %v54_v20 = vld [vmem:[#allocation5 + $0x60] sm:$0xff]  ;;  %p297_p2 = scmp.ne.s32.totalorder %s152_s10, %s296_s13  ;;  %p301_p3 = scmp.lt.s32.totalorder %s152_s10, %s152_s10 }
  0x2c   :  { %225 = vmatprep.subr.bf16.mxu0 %v352_v0  ;;  %v238_v19 = vpack.c.bf16 %v53_v18, %v52_v17  ;;  %v55_v21 = vld [vmem:[#allocation5 + $0x68] sm:$0xff]  ;;  %v41_v23 = vld [vmem:[#allocation2] sm:$0xff]  ;;  %p302_p4 = scmp.lt.s32.totalorder %s300_s14, %s296_s13 }
  0x2d   :  { %v241_v22 = vpack.c.bf16 %v55_v21, %v54_v20 }
  0x2e   :  { %p303_p5 = por %p302_p4, %p301_p3 }
  0x2f   :  { %227 = vmatpush3.bf16.msra.mxu0 %v226_v7 }
  0x30   :  { %228 = vmatprep.subr.bf16.mxu0 %v352_v0  ;;  %p304_p6 = pnand %p303_p5, %p297_p2 }
  0x33   :  { %230 = vmatpush3.bf16.msra.mxu0 %v229_v10 }
  0x34   :  { %231 = vmatprep.subr.bf16.mxu0 %v352_v0 }
  0x37   :  { %233 = vmatpush3.bf16.msra.mxu0 %v232_v13 }
  0x38   :  { %234 = vmatprep.subr.bf16.mxu0 %v352_v0 }
  0x3b   :  { %236 = vmatpush3.bf16.msra.mxu0 %v235_v16 }
  0x3c   :  { %237 = vmatprep.subr.bf16.mxu0 %v352_v0 }
  0x3f   :  { %239 = vmatpush3.bf16.msra.mxu0 %v238_v19 }
  0x40   :  { %240 = vmatprep.subr.bf16.mxu0 %v352_v0 }
  0x43   :  { %242 = vmatpush3.bf16.msra.mxu0 %v241_v22 }
  0x46   :  { %220 = vmatmul.mubr.msk.f32.vlgmr.msra.gmra.mrb[0].mxu0 %vm56_vm1, %v41_v23 }
 0x119   :  { %v126_v24 = vpop.f32.mrb[0].mxu0 }
 0x11a   :  { %v130_v25 = vrot.slane %v126_v24, 4  ;;  %v137_v26 = vmul.f32 %v126_v24, %v126_v24  ;;  %v221_v27 = vpop.f32.mrb[1].mxu0 }
 0x11c   :  { %v131_v28 = vadd.f32 %v130_v25, %v126_v24  ;;  %v138_v29 = vrot.slane %v137_v26, 4 }
 0x11e   :  { %v132_v30 = vrot.slane %v131_v28, 2  ;;  %v139_v31 = vadd.f32 %v138_v29, %v137_v26 }
 0x120   :  { %v133_v32 = vadd.f32 %v132_v30, %v131_v28  ;;  %v140_v33 = vrot.slane %v139_v31, 2 }
 0x122   :  { %v134_v34 = vrot.slane %v133_v32, 1  ;;  %v141_v35 = vadd.f32 %v140_v33, %v139_v31 }
 0x124   :  { %v135_v36 = vadd.f32 %v134_v34, %v133_v32  ;;  %v142_v37 = vrot.slane %v141_v35, 1 }
 0x126   :  { %136 = vst [vmem:[#allocation7] sm:$0x1] %v135_v36  ;;  %v143_v38 = vadd.f32 %v142_v37, %v141_v35 }
 0x127   :  { %307 = shalt.err (!%p304_p6)
}
 0x128   :  { %s308_s17 = scalar_lea.hbm %s442_s2, 16 }
 0x129   :  { %p309_p7 = scmp.ne.s32.totalorder %s442_s2, %s308_s17  ;;  %p312_p8 = scmp.lt.u32.totalorder %s308_s17, %s442_s2 }
 0x12b   :  { %p314_p9 = pnand %p312_p8, %p309_p7 }
 0x12d   :  { %317 = shalt.err (!%p314_p9)
}
 0x12e   :  { %154 = dma.vmem_to_hbm [thread:$0]  %s152_s10, 16, %s442_s2, [#allocation4]   ;;  %144 = vst [vmem:[#allocation8] sm:$0x1] %v143_v38 }
 0x12f   :  { %s318_s24 = scalar_lea.vmem %s408_s12, 16  ;;  %s322_s25 = scalar_lea.vmem %s408_s12, 32 }
 0x130   :  { %p319_p10 = scmp.ne.s32.totalorder %s408_s12, %s318_s24  ;;  %p323_p11 = scmp.lt.s32.totalorder %s408_s12, %s408_s12 }
 0x131   :  { %p324_p12 = scmp.lt.s32.totalorder %s322_s25, %s318_s24 }
 0x133   :  { %p325_p13 = por %p324_p12, %p323_p11 }
 0x135   :  { %p326_p0 = pnand %p325_p13, %p319_p10 }
 0x137   :  { %329 = shalt.err (!%p326_p0)
}
 0x138   :  { %s330_s28 = scalar_lea.hbm %s443_s3, 16 }
 0x139   :  { %p331_p1 = scmp.ne.s32.totalorder %s443_s3, %s330_s28  ;;  %p334_p2 = scmp.lt.u32.totalorder %s330_s28, %s443_s3 }
 0x13b   :  { %p336_p3 = pnand %p334_p2, %p331_p1 }
 0x13d   :  { %339 = shalt.err (!%p336_p3)
}
 0x13e   :  { %164 = dma.vmem_to_hbm [thread:$0]  %s408_s12, 16, %s443_s3, [#allocation9]  }
 0x13f   :  { %344 = dma.done.wait [#allocation4], 16  }
 0x140   :  { %345 = vsyncadd [#allocation4], 4294967280 }
 0x141   :  { %346 = dma.done.wait [#allocation9], 16  }
 0x142   :  { %347 = vsyncadd [#allocation9], 4294967280 }
 0x143   :  { %171 = vsyncpa [#allocation3], 1 }
 0x144   :  { %172 = vsyncpa [#allocation6], 1 }
 0x145   :  { %173 = vsyncpa [#allocation4], 1 }
 0x146   :  { %174 = vsyncpa [#allocation9], 1 }

</bundles_post_ra>
